<compile_context>
chip_gen: v5e
topology: v5e:2x2
jax: 0.10.0
libtpu: 0.0.40
codegen_flags: <defaults>
</compile_context>

<pallas_src>
import jax
import jax.numpy as jnp
from jax.experimental import pallas as pl
from jax.experimental.pallas import tpu as pltpu

# Small, deterministic problem size (NCDHW input).
N, C_IN, C_OUT = 2, 4, 8
D = H = W = 8
K = 3
EPS = 1e-5   # nn.BatchNorm3d default eps
KPAD = 128   # contraction depth 27*C_IN = 108, zero-padded to 128 (one MXU tile)


def conv_bn_relu_kernel(w_ref, x_ref, gb_ref, o_ref):
    """w_ref: (Cout, KPAD) bf16 folded weights; x_ref: (KPAD, M) bf16 folded
    im2col; gb_ref: (Cout, 2) f32 [gamma | beta]; o_ref: (N, Cout, DHW) f32."""
    # Single deep contraction on the MXU (bf16 in, f32 accumulate).
    acc = jnp.dot(w_ref[...], x_ref[...],
                  preferred_element_type=jnp.float32)            # (Cout, M)

    # BatchNorm3d, training mode: biased batch stats over (N, D, H, W) per
    # channel.  Conv bias omitted -- it cancels against the mean subtraction.
    m = acc.shape[1]
    inv_m = 1.0 / m                                              # static const
    mean = jnp.sum(acc, axis=1, keepdims=True) * inv_m           # (Cout, 1)
    centered = acc - mean
    var = jnp.sum(centered * centered, axis=1, keepdims=True) * inv_m

    gb = gb_ref[...]                                             # (Cout, 2)
    gamma = gb[:, 0:1]
    beta = gb[:, 1:2]
    scale = gamma * jax.lax.rsqrt(var + EPS)                     # (Cout, 1)
    shift = beta - mean * scale                                  # (Cout, 1)

    # Fused BN affine + ReLU (one FMA + max per element, lane-dense).
    y = jnp.maximum(acc * scale + shift, 0.0)                    # (Cout, M)

    # Write per-batch (Cout, DHW) slabs so the wrapper needs only a reshape
    # (no trailing NCDHW transpose).  M is ordered (n, d, h, w), so batch b
    # occupies columns [b*dhw, (b+1)*dhw) -- static, 128-aligned slices.
    n_batch = o_ref.shape[0]
    dhw = m // n_batch
    for b in range(n_batch):
        o_ref[b] = y[:, b * dhw:(b + 1) * dhw]


@jax.jit
def conv_forward(x_ncdhw, weight, bias, gamma, beta):
    """Equivalent of Conv(in, out, dim=3).forward(x) with default flags.

    `bias` is accepted for signature parity but is algebraically a no-op under
    training-mode BatchNorm (and is zero-initialized by _init_weights)."""
    del bias
    n, cin, d, h, w = x_ncdhw.shape
    cout = weight.shape[0]
    kvol = K * K * K
    M = n * d * h * w
    dhw = d * h * w

    # NCDHW -> CNDHW (cheap: channels-first), pad spatial dims by 1.
    x_c = jnp.transpose(x_ncdhw, (1, 0, 2, 3, 4))
    xp = jnp.pad(x_c, ((0, 0), (0, 0), (1, 1), (1, 1), (1, 1)))

    # Channels-first folded im2col: every tap slice is already (Cin, M), so the
    # (27*Cin, M) slab is a single axis-0 concatenation -- no big transpose.
    taps = []
    for kd in range(K):
        for kh in range(K):
            for kw in range(K):
                taps.append(
                    xp[:, :, kd:kd + d, kh:kh + h, kw:kw + w].reshape(cin, M))
    x_t = jnp.concatenate(taps, axis=0)                          # (108, M)
    x_t = jnp.pad(x_t, ((0, KPAD - kvol * cin), (0, 0)))
    x_t = x_t.astype(jnp.bfloat16)                               # (KPAD, M)

    # Torch Conv3d weight (Cout, Cin, kD, kH, kW) -> (Cout, 27*Cin), column
    # order matching the tap order above ((kd, kh, kw) outer, cin inner).
    w_t = jnp.transpose(weight, (0, 2, 3, 4, 1)).reshape(cout, kvol * cin)
    w_t = jnp.pad(w_t, ((0, 0), (0, KPAD - kvol * cin)))
    w_t = w_t.astype(jnp.bfloat16)                               # (Cout, KPAD)

    # Fold gamma/beta into one small block: one load instead of two.
    gb = jnp.stack([gamma, beta], axis=1).astype(jnp.float32)    # (Cout, 2)

    out = pl.pallas_call(
        conv_bn_relu_kernel,
        out_shape=jax.ShapeDtypeStruct((n, cout, dhw), jnp.float32),
        grid=(1,),
        in_specs=[
            pl.BlockSpec((cout, KPAD), lambda i: (0, 0)),
            pl.BlockSpec((KPAD, M), lambda i: (0, 0)),
            pl.BlockSpec((cout, 2), lambda i: (0, 0)),
        ],
        out_specs=pl.BlockSpec((n, cout, dhw), lambda i: (0, 0, 0)),
        compiler_params=pltpu.CompilerParams(
            dimension_semantics=("arbitrary",),
            # Interim step toward in-kernel im2col: let XLA fuse the
            # pad/slice/concat/cast producer chain into the slab operand.
            allow_input_fusion=[False, True, False],
        ),
    )(w_t, x_t, gb)

    # (N, Cout, DHW) -> NCDHW is a pure reshape (no relayout).
    return out.reshape(n, cout, d, h, w)


@jax.jit
def reference(x, weight, bias, gamma, beta):
    """Pure-JAX f32 reference of the same forward pass (for verification)."""
    y = jax.lax.conv_general_dilated(
        x, weight, window_strides=(1, 1, 1),
        padding=((1, 1), (1, 1), (1, 1)),
        dimension_numbers=("NCDHW", "OIDHW", "NCDHW"))
    y = y + bias.reshape(1, -1, 1, 1, 1)
    mean = jnp.mean(y, axis=(0, 2, 3, 4), keepdims=True)
    var = jnp.mean((y - mean) ** 2, axis=(0, 2, 3, 4), keepdims=True)
    y = (y - mean) * jax.lax.rsqrt(var + EPS)
    y = y * gamma.reshape(1, -1, 1, 1, 1) + beta.reshape(1, -1, 1, 1, 1)
    return jnp.maximum(y, 0.0)


if __name__ == "__main__":
    key = jax.random.PRNGKey(0)
    kx, kw = jax.random.split(key)

    x = jax.random.normal(kx, (N, C_IN, D, H, W), jnp.float32)

    # _init_weights: kaiming_normal_(nonlinearity='relu') => std = sqrt(2/fan_in),
    # fan_in = Cin*3*3*3; conv bias zeroed; BN gamma=1, beta=0 (PyTorch defaults).
    fan_in = C_IN * K * K * K
    weight = jax.random.normal(kw, (C_OUT, C_IN, K, K, K), jnp.float32) * jnp.sqrt(
        2.0 / fan_in)
    bias = jnp.zeros((C_OUT,), jnp.float32)
    gamma = jnp.ones((C_OUT,), jnp.float32)
    beta = jnp.zeros((C_OUT,), jnp.float32)

    out = jax.block_until_ready(conv_forward(x, weight, bias, gamma, beta))
    ref = jax.block_until_ready(reference(x, weight, bias, gamma, beta))

    assert out.shape == (N, C_OUT, D, H, W)
    # Tolerance reflects bf16 MXU operands (f32 accumulation / f32 BN stats).
    assert jnp.allclose(out, ref, atol=3e-2, rtol=3e-2), (
        f"max abs diff {jnp.max(jnp.abs(out - ref))}")

    print("KERNEL_OK")
</pallas_src>

<mosaic_0001>
module attributes {stable_mosaic.version = 11 : i64} {
  func.func @conv_bn_relu_kernel(%arg0: i32, %arg1: memref<8x128xbf16, #tpu.memory_space<vmem>>, %arg2: memref<128x1024xbf16, #tpu.memory_space<vmem>>, %arg3: memref<8x2xf32, #tpu.memory_space<vmem>>, %arg4: memref<2x8x512xf32, #tpu.memory_space<vmem>>) attributes {dimension_semantics = [#tpu.dimension_semantics<arbitrary>], iteration_bounds = array<i64: 1>, scalar_prefetch = 0 : i64, scratch_operands = 0 : i64, tpu.core_type = #tpu.core_type<tc>, window_params = [{pipeline_mode = #tpu.pipeline_mode<synchronous>, transform_indices = @transform_0, window_bounds = array<i64: 8, 128>}, {pipeline_mode = #tpu.pipeline_mode<synchronous>, transform_indices = @transform_1, window_bounds = array<i64: 128, 1024>}, {pipeline_mode = #tpu.pipeline_mode<synchronous>, transform_indices = @transform_2, window_bounds = array<i64: 8, 2>}, {pipeline_mode = #tpu.pipeline_mode<synchronous>, transform_indices = @transform_3, window_bounds = array<i64: 2, 8, 512>}]} {
    %c0 = arith.constant 0 : index
    %c0_0 = arith.constant 0 : index
    %0 = vector.load %arg1[%c0, %c0_0] : memref<8x128xbf16, #tpu.memory_space<vmem>>, vector<8x128xbf16>
    %c0_1 = arith.constant 0 : index
    %c0_2 = arith.constant 0 : index
    %1 = vector.load %arg2[%c0_1, %c0_2] : memref<128x1024xbf16, #tpu.memory_space<vmem>>, vector<128x1024xbf16>
    %cst = arith.constant dense<0.000000e+00> : vector<8x1024xf32>
    %2 = tpu.matmul %0, %1, %cst {dimension_numbers = #tpu.dot_dimension_numbers<[1], [0], [0], [1], [0, 0, 1, 1], [], []>} : vector<8x128xbf16>, vector<128x1024xbf16>, vector<8x1024xf32> -> vector<8x1024xf32>
    %cst_3 = arith.constant dense<0.000000e+00> : vector<8xf32>
    %3 = vector.multi_reduction <add>, %2, %cst_3 [1] : vector<8x1024xf32> to vector<8xf32>
    %4 = vector.shape_cast %3 : vector<8xf32> to vector<8x1xf32>
    %cst_4 = arith.constant 9.765625E-4 : f32
    %5 = vector.broadcast %cst_4 : f32 to vector<8x1xf32>
    %6 = arith.mulf %4, %5 : vector<8x1xf32>
    %7 = vector.broadcast %6 : vector<8x1xf32> to vector<8x1024xf32>
    %8 = arith.subf %2, %7 : vector<8x1024xf32>
    %9 = arith.mulf %8, %8 : vector<8x1024xf32>
    %cst_5 = arith.constant dense<0.000000e+00> : vector<8xf32>
    %10 = vector.multi_reduction <add>, %9, %cst_5 [1] : vector<8x1024xf32> to vector<8xf32>
    %11 = vector.shape_cast %10 : vector<8xf32> to vector<8x1xf32>
    %cst_6 = arith.constant 9.765625E-4 : f32
    %12 = vector.broadcast %cst_6 : f32 to vector<8x1xf32>
    %13 = arith.mulf %11, %12 : vector<8x1xf32>
    %c0_7 = arith.constant 0 : index
    %c0_8 = arith.constant 0 : index
    %14 = vector.load %arg3[%c0_7, %c0_8] : memref<8x2xf32, #tpu.memory_space<vmem>>, vector<8x2xf32>
    %15 = vector.extract_strided_slice %14 {offsets = [0, 0], sizes = [8, 1], strides = [1, 1]} : vector<8x2xf32> to vector<8x1xf32>
    %16 = vector.extract_strided_slice %14 {offsets = [0, 1], sizes = [8, 1], strides = [1, 1]} : vector<8x2xf32> to vector<8x1xf32>
    %cst_9 = arith.constant 9.99999974E-6 : f32
    %17 = vector.broadcast %cst_9 : f32 to vector<8x1xf32>
    %18 = arith.addf %13, %17 : vector<8x1xf32>
    %19 = math.rsqrt %18 : vector<8x1xf32>
    %20 = arith.mulf %15, %19 : vector<8x1xf32>
    %21 = arith.mulf %6, %20 : vector<8x1xf32>
    %22 = arith.subf %16, %21 : vector<8x1xf32>
    %23 = vector.broadcast %20 : vector<8x1xf32> to vector<8x1024xf32>
    %24 = arith.mulf %2, %23 : vector<8x1024xf32>
    %25 = vector.broadcast %22 : vector<8x1xf32> to vector<8x1024xf32>
    %26 = arith.addf %24, %25 : vector<8x1024xf32>
    %cst_10 = arith.constant 0.000000e+00 : f32
    %27 = vector.broadcast %cst_10 : f32 to vector<8x1024xf32>
    %28 = arith.maximumf %26, %27 : vector<8x1024xf32>
    %29 = vector.extract_strided_slice %28 {offsets = [0, 0], sizes = [8, 512], strides = [1, 1]} : vector<8x1024xf32> to vector<8x512xf32>
    %c0_11 = arith.constant 0 : index
    %c0_12 = arith.constant 0 : index
    %c0_13 = arith.constant 0 : index
    %30 = vector.load %arg4[%c0_11, %c0_12, %c0_13] : memref<2x8x512xf32, #tpu.memory_space<vmem>>, vector<1x8x512xf32>
    %31 = vector.shape_cast %30 : vector<1x8x512xf32> to vector<8x512xf32>
    %32 = vector.shape_cast %29 : vector<8x512xf32> to vector<1x8x512xf32>
    tpu.vector_store %arg4[%c0_11, %c0_12, %c0_13], %32 {strides = array<i32>} : memref<2x8x512xf32, #tpu.memory_space<vmem>>, vector<1x8x512xf32>,
    %33 = vector.extract_strided_slice %28 {offsets = [0, 512], sizes = [8, 512], strides = [1, 1]} : vector<8x1024xf32> to vector<8x512xf32>
    %c1 = arith.constant 1 : index
    %c0_14 = arith.constant 0 : index
    %c0_15 = arith.constant 0 : index
    %34 = vector.load %arg4[%c1, %c0_14, %c0_15] : memref<2x8x512xf32, #tpu.memory_space<vmem>>, vector<1x8x512xf32>
    %35 = vector.shape_cast %34 : vector<1x8x512xf32> to vector<8x512xf32>
    %36 = vector.shape_cast %33 : vector<8x512xf32> to vector<1x8x512xf32>
    tpu.vector_store %arg4[%c1, %c0_14, %c0_15], %36 {strides = array<i32>} : memref<2x8x512xf32, #tpu.memory_space<vmem>>, vector<1x8x512xf32>,
    return
  }
  func.func @transform_0(%arg0: i32) -> (i32, i32) {
    %c0_i32 = arith.constant 0 : i32
    %c0_i32_0 = arith.constant 0 : i32
    %c0_i32_1 = arith.constant 0 : i32
    return %c0_i32, %c0_i32_0 : i32, i32
  }
  func.func @transform_1(%arg0: i32) -> (i32, i32) {
    %c0_i32 = arith.constant 0 : i32
    %c0_i32_0 = arith.constant 0 : i32
    %c0_i32_1 = arith.constant 0 : i32
    return %c0_i32, %c0_i32_0 : i32, i32
  }
  func.func @transform_2(%arg0: i32) -> (i32, i32) {
    %c0_i32 = arith.constant 0 : i32
    %c0_i32_0 = arith.constant 0 : i32
    %c0_i32_1 = arith.constant 0 : i32
    return %c0_i32, %c0_i32_0 : i32, i32
  }
  func.func @transform_3(%arg0: i32) -> (i32, i32, i32) {
    %c0_i32 = arith.constant 0 : i32
    %c0_i32_0 = arith.constant 0 : i32
    %c0_i32_1 = arith.constant 0 : i32
    %c0_i32_2 = arith.constant 0 : i32
    return %c0_i32, %c0_i32_0, %c0_i32_1 : i32, i32, i32
  }
}

</mosaic_0001>

<bundles_post_ra>
// kernel: conv_forward.2
= control target key start
LH: loop header
LB: loop body
LE: loop exit
PB: predicated region body
PF: predicated region fallthrough
CT: control target
= control target key end

     0   :  { %s3780_s0 = inlined_call_operand.vmem [shape: bf16[8,128], index: 0, kind: input, shape index: {}]   ;;  %s3781_s1 = inlined_call_operand.vmem [shape: f32[8,2], index: 1, kind: input, shape index: {}]   ;;  %s3782_s2 = inlined_call_operand.vmem [shape: bf16[108,1024], index: 2, kind: input, shape index: {}]   ;;  %s3783_s3 = inlined_call_operand.<no memory space> [shape: bf16[], index: 3, kind: input, shape index: {}]   ;;  %s3784_s4 = inlined_call_operand.vmem [shape: f32[2,8,512], index: 4, kind: output, shape index: {}]  }
   0x1   :  { %v9_v0 = vstv %s3783_s3 }
   0x2   :  { %v3497_v1 = vunpack.i.l.bf16 %v9_v0 }
   0x3   :  { %v2576_v3 = vld [vmem:[%s3782_s2 + $0x1a0] sm:$0xff]   ;;  %v1631_v4 = vlaneseq  ;;  %v2578_v5 = vld [vmem:[%s3782_s2 + $0x1a8] sm:$0xff]   ;;  %s3467_s21 = smov 1  }
   0x4   :  { %v3166_v2 = vpack.c.bf16 %v3497_v1, %v3497_v1  ;;  %v1629_v7 = vunpack.c.l.bf16 %v2576_v3  ;;  %v1652_v8 = vunpack.c.h.bf16 %v2576_v3  ;;  %v1675_v9 = vunpack.c.l.bf16 %v2578_v5  ;;  %v3454_v12 = vld [vmem:[%s3782_s2 + $0x180] sm:$0xff]  ;;  %v3455_v21 = vld [vmem:[%s3782_s2 + $0x188] sm:$0xff] }
   0x5   :  { %v1632_v6 = vshrl.u32 %v1631_v4, 7  ;;  %v1698_v11 = vunpack.c.h.bf16 %v2578_v5  ;;  %3147 = vst [vmem:[#allocation7 + $0x180] sm:$0xff] %v3454_v12   ;;  %v3446_v28 = vld [vmem:[%s3782_s2 + $0x140] sm:$0xff]  ;;  %v3447_v32 = vld [vmem:[%s3782_s2 + $0x148] sm:$0xff] }
   0x6   :  { %3167 = vst [vmem:[#allocation7 + $0x1c0] sm:$0xff] %v3166_v2   ;;  %v3450_v31 = vld [vmem:[%s3782_s2 + $0x160] sm:$0xff]  ;;  %v3451_v37 = vld [vmem:[%s3782_s2 + $0x168] sm:$0xff] }
   0x7   :  { %3187 = vst [vmem:[#allocation7 + $0x1e0] sm:$0xff] %v3166_v2   ;;  %v3507_v10 = vadd.s32 104, %v1632_v6  ;;  %v3438_v38 = vld [vmem:[%s3782_s2 + $0x100] sm:$0xff]  ;;  %v3439_v43 = vld [vmem:[%s3782_s2 + $0x108] sm:$0xff] }
   0x8   :  { %3172 = vst [vmem:[#allocation7 + $0x1c8] sm:$0xff] %v3166_v2   ;;  %v3442_v41 = vld [vmem:[%s3782_s2 + $0x120] sm:$0xff]  ;;  %v3443_v46 = vld [vmem:[%s3782_s2 + $0x128] sm:$0xff] }
   0x9   :  { %3177 = vst [vmem:[#allocation7 + $0x1d0] sm:$0xff] %v3166_v2   ;;  %vm1634_vm0 = vcmp.lt.s32.totalorder %v3507_v10, 108  ;;  %v3430_v50 = vld [vmem:[%s3782_s2 + $0xc0] sm:$0xff]  ;;  %v3431_v53 = vld [vmem:[%s3782_s2 + $0xc8] sm:$0xff] }
   0xa   :  { %3182 = vst [vmem:[#allocation7 + $0x1d8] sm:$0xff] %v3166_v2   ;;  %v1635_v13 = vsel %vm1634_vm0, %v1629_v7, %v3497_v1  ;;  %v1658_v14 = vsel %vm1634_vm0, %v1652_v8, %v3497_v1  ;;  %v1681_v15 = vsel %vm1634_vm0, %v1675_v9, %v3497_v1  ;;  %v1704_v18 = vsel %vm1634_vm0, %v1698_v11, %v3497_v1  ;;  %v3434_v52 = vld [vmem:[%s3782_s2 + $0xe0] sm:$0xff]  ;;  %v3435_v56 = vld [vmem:[%s3782_s2 + $0xe8] sm:$0xff]  ;;  %v3582_v11 = vld [vmem:[%s3782_s2 + $0x1b0] sm:$0xff]  }
   0xb   :  { %3192 = vst [vmem:[#allocation7 + $0x1e8] sm:$0xff] %v3166_v2   ;;  %v1637_v16 = vpack.c.bf16 0.0, %v1635_v13  ;;  %v1660_v17 = vpack.c.bf16 0.0, %v1658_v14  ;;  %v1683_v24 = vpack.c.bf16 0.0, %v1681_v15  ;;  %v1706_v27 = vpack.c.bf16 0.0, %v1704_v18  ;;  %v3422_v57 = vld [vmem:[%s3782_s2 + $0x80] sm:$0xff] }
   0xc   :  { %3197 = vst [vmem:[#allocation7 + $0x1f0] sm:$0xff] %v3166_v2   ;;  %v2778_v39 = vld [vmem:[#allocation7 + $0x180] sm:$0xf]  ;;  %v2892_v40 = vld [vmem:[#allocation7 + $0x184] sm:$0xf]  ;;  %v3423_v0 = vld [vmem:[%s3782_s2 + $0x88] sm:$0xff] }
   0xd   :  { %v2810_v19 = vld [vmem:[#allocation7 + $0x1c0] sm:$0xf]  ;;  %3202 = vst [vmem:[#allocation7 + $0x1f8] sm:$0xff] %v3166_v2   ;;  %v2900_v20 = vld [vmem:[#allocation7 + $0x1c4] sm:$0xf]  ;;  %v3427_v6 = vld [vmem:[%s3782_s2 + $0xa8] sm:$0xff] }
   0xe   :  { %v2904_v22 = vld [vmem:[#allocation7 + $0x1dc] sm:$0xf0]  ;;  %v2812_v23 = vld [vmem:[#allocation7 + $0x1e0] sm:$0xf0]  ;;  %1640 = vst [vmem:[#allocation7 + $0x1a0] sm:$0xf] %v1637_v16 }
   0xf   :  { %v2811_v25 = vor.u32 %v2904_v22, %v2810_v19  ;;  %v2815_v26 = vor.u32 %v2900_v20, %v2812_v23  ;;  %v2818_v29 = vld [vmem:[#allocation7 + $0x1c8] sm:$0xf]  ;;  %v2901_v30 = vld [vmem:[#allocation7 + $0x1cc] sm:$0xf]  ;;  %1663 = vst [vmem:[#allocation7 + $0x1a4] sm:$0xf] %v1660_v17 }
  0x10   :  { %3152 = vst [vmem:[#allocation7 + $0x188] sm:$0xff] %v3455_v21   ;;  %v3426_v61 = vld [vmem:[%s3782_s2 + $0xa0] sm:$0xff]  ;;  %v3415_v19 = vld [vmem:[%s3782_s2 + $0x48] sm:$0xff] }
  0x11   :  { %2267 = vmatpush.bf16.msra.mxu0 %v2811_v25  ;;  %2280 = vmatpush.bf16.msra.mxu1 %v2815_v26  ;;  %1686 = vst [vmem:[#allocation7 + $0x1a8] sm:$0xf] %v1683_v24  ;;  %v3414_v9 = vld [vmem:[%s3782_s2 + $0x40] sm:$0xff]  ;;  %v1721_v24 = vunpack.c.l.bf16 %v3582_v11  ;;  %v2582_v25 = vld [vmem:[%s3782_s2 + $0x1b8] sm:$0xff]  }
  0x12   :  { %v2905_v33 = vld [vmem:[#allocation7 + $0x1e4] sm:$0xf0]  ;;  %v2820_v34 = vld [vmem:[#allocation7 + $0x1e8] sm:$0xf0]  ;;  %1709 = vst [vmem:[#allocation7 + $0x1ac] sm:$0xf] %v1706_v27 }
  0x13   :  { %v2819_v35 = vor.u32 %v2905_v33, %v2818_v29  ;;  %v2823_v36 = vor.u32 %v2901_v30, %v2820_v34  ;;  %3107 = vst [vmem:[#allocation7 + $0x140] sm:$0xff] %v3446_v28   ;;  %v3418_v16 = vld [vmem:[%s3782_s2 + $0x60] sm:$0xff]  ;;  %v3419_v28 = vld [vmem:[%s3782_s2 + $0x68] sm:$0xff]  ;;  %v1744_v34 = vunpack.c.h.bf16 %v3582_v11  ;;  %v2906_v11 = vld [vmem:[#allocation7 + $0x1ec] sm:$0xf0] }
  0x14   :  { %3127 = vst [vmem:[#allocation7 + $0x160] sm:$0xff] %v3450_v31   ;;  %v20_v33 = vld [vmem:[%s3782_s2] sm:$0xff]  }
  0x15   :  { %2293 = vmatpush.bf16.msra.mxu2 %v2819_v35  ;;  %2306 = vmatpush.bf16.msra.mxu3 %v2823_v36  ;;  %v2896_v42 = vld [vmem:[#allocation7 + $0x19c] sm:$0xf0]  ;;  %3112 = vst [vmem:[#allocation7 + $0x148] sm:$0xff] %v3447_v32  }
  0x16   :  { %v2779_v44 = vor.u32 %v2896_v42, %v2778_v39  ;;  %v2780_v45 = vld [vmem:[#allocation7 + $0x1a0] sm:$0xf0]  ;;  %3132 = vst [vmem:[#allocation7 + $0x168] sm:$0xff] %v3451_v37   ;;  %v1790_v39 = vunpack.c.h.bf16 %v2582_v25 }
  0x17   :  { %v2783_v47 = vor.u32 %v2892_v40, %v2780_v45  ;;  %v2786_v48 = vld [vmem:[#allocation7 + $0x188] sm:$0xf]  ;;  %v2893_v49 = vld [vmem:[#allocation7 + $0x18c] sm:$0xf]  ;;  %3067 = vst [vmem:[#allocation7 + $0x100] sm:$0xff] %v3438_v38   ;;  %v3410_v37 = vld [vmem:[%s3782_s2 + $0x20] sm:$0xff]  ;;  %v1767_v38 = vunpack.c.l.bf16 %v2582_v25  ;;  %v1727_v45 = vsel %vm1634_vm0, %v1721_v24, %v3497_v1 }
  0x18   :  { %2268 = vmatpush.bf16.msra.mxu0 %v2779_v44  ;;  %v2897_v51 = vld [vmem:[#allocation7 + $0x1a4] sm:$0xf0]  ;;  %3087 = vst [vmem:[#allocation7 + $0x120] sm:$0xff] %v3442_v41   ;;  %v3448_v24 = vld [vmem:[%s3782_s2 + $0x150] sm:$0xff] }
  0x19   :  { %2281 = vmatpush.bf16.msra.mxu1 %v2783_v47  ;;  %v2787_v54 = vor.u32 %v2897_v51, %v2786_v48  ;;  %v2788_v55 = vld [vmem:[#allocation7 + $0x1a8] sm:$0xf0]  ;;  %3072 = vst [vmem:[#allocation7 + $0x108] sm:$0xff] %v3439_v43  }
  0x1a   :  { %v2791_v58 = vor.u32 %v2893_v49, %v2788_v55  ;;  %v2746_v59 = vld [vmem:[#allocation7 + $0x140] sm:$0xf]  ;;  %v2884_v60 = vld [vmem:[#allocation7 + $0x144] sm:$0xf]  ;;  %3092 = vst [vmem:[#allocation7 + $0x128] sm:$0xff] %v3443_v46   ;;  %v3407_v44 = vld [vmem:[%s3782_s2 + $0x8] sm:$0xff] }
  0x1b   :  { %2294 = vmatpush.bf16.msra.mxu2 %v2787_v54  ;;  %v2888_v62 = vld [vmem:[#allocation7 + $0x15c] sm:$0xf0]  ;;  %v2748_v63 = vld [vmem:[#allocation7 + $0x160] sm:$0xf0]  ;;  %3027 = vst [vmem:[#allocation7 + $0xc0] sm:$0xff] %v3430_v50   ;;  %v3411_v48 = vld [vmem:[%s3782_s2 + $0x28] sm:$0xff]  ;;  %v1750_v54 = vsel %vm1634_vm0, %v1744_v34, %v3497_v1 }
  0x1c   :  { %2307 = vmatpush.bf16.msra.mxu3 %v2791_v58  ;;  %v2747_v2 = vor.u32 %v2888_v62, %v2746_v59  ;;  %v2751_v3 = vor.u32 %v2884_v60, %v2748_v63  ;;  %v2754_v4 = vld [vmem:[#allocation7 + $0x148] sm:$0xf]  ;;  %v2885_v5 = vld [vmem:[#allocation7 + $0x14c] sm:$0xf]  ;;  %3047 = vst [vmem:[#allocation7 + $0xe0] sm:$0xff] %v3434_v52   ;;  %v1773_v58 = vsel %vm1634_vm0, %v1767_v38, %v3497_v1  ;;  %v3457_v63 = vld [vmem:[%s3782_s2 + $0x198] sm:$0xff] }
  0x1d   :  { %v2889_v7 = vld [vmem:[#allocation7 + $0x164] sm:$0xf0]  ;;  %v2756_v8 = vld [vmem:[#allocation7 + $0x168] sm:$0xf0]  ;;  %3032 = vst [vmem:[#allocation7 + $0xc8] sm:$0xff] %v3431_v53   ;;  %v3456_v53 = vld [vmem:[%s3782_s2 + $0x190] sm:$0xff] }
  0x1e   :  { %2269 = vmatpush.bf16.msra.mxu0 %v2747_v2  ;;  %2282 = vmatpush.bf16.msra.mxu1 %v2751_v3  ;;  %v2755_v12 = vor.u32 %v2889_v7, %v2754_v4  ;;  %v2759_v13 = vor.u32 %v2885_v5, %v2756_v8  ;;  %v2714_v14 = vld [vmem:[#allocation7 + $0x100] sm:$0xf]  ;;  %v2876_v15 = vld [vmem:[#allocation7 + $0x104] sm:$0xf]  ;;  %3052 = vst [vmem:[#allocation7 + $0xe8] sm:$0xff] %v3435_v56   ;;  %v1752_v4 = vpack.c.bf16 0.0, %v1750_v54 }
  0x1f   :  { %v2880_v17 = vld [vmem:[#allocation7 + $0x11c] sm:$0xf0]  ;;  %v2716_v18 = vld [vmem:[#allocation7 + $0x120] sm:$0xf0]  ;;  %2987 = vst [vmem:[#allocation7 + $0x80] sm:$0xff] %v3422_v57   ;;  %v1729_v57 = vpack.c.bf16 0.0, %v1727_v45 }
  0x20   :  { %2295 = vmatpush.bf16.msra.mxu2 %v2755_v12  ;;  %2308 = vmatpush.bf16.msra.mxu3 %v2759_v13  ;;  %v2715_v20 = vor.u32 %v2880_v17, %v2714_v14  ;;  %v2719_v21 = vor.u32 %v2876_v15, %v2716_v18  ;;  %v2722_v22 = vld [vmem:[#allocation7 + $0x108] sm:$0xf]  ;;  %v2877_v23 = vld [vmem:[#allocation7 + $0x10c] sm:$0xf]  ;;  %3007 = vst [vmem:[#allocation7 + $0xa0] sm:$0xff] %v3426_v61   ;;  %v1775_v14 = vpack.c.bf16 0.0, %v1773_v58 }
  0x21   :  { %v2881_v26 = vld [vmem:[#allocation7 + $0x124] sm:$0xf0]  ;;  %v2724_v27 = vld [vmem:[#allocation7 + $0x128] sm:$0xf0]  ;;  %2992 = vst [vmem:[#allocation7 + $0x88] sm:$0xff] %v3423_v0   ;;  %v1796_v0 = vsel %vm1634_vm0, %v1790_v39, %v3497_v1  ;;  %v3453_v45 = vld [vmem:[%s3782_s2 + $0x178] sm:$0xff] }
  0x22   :  { %2270 = vmatpush.bf16.msra.mxu0 %v2715_v20  ;;  %2283 = vmatpush.bf16.msra.mxu1 %v2719_v21  ;;  %v2723_v29 = vor.u32 %v2881_v26, %v2722_v22  ;;  %v2727_v30 = vor.u32 %v2877_v23, %v2724_v27  ;;  %v2682_v31 = vld [vmem:[#allocation7 + $0xc0] sm:$0xf]  ;;  %v2868_v32 = vld [vmem:[#allocation7 + $0xc4] sm:$0xf]  ;;  %3012 = vst [vmem:[#allocation7 + $0xa8] sm:$0xff] %v3427_v6   ;;  %v1798_v1 = vpack.c.bf16 0.0, %v1796_v0 }
  0x23   :  { %v2872_v35 = vld [vmem:[#allocation7 + $0xdc] sm:$0xf0]  ;;  %v2684_v36 = vld [vmem:[#allocation7 + $0xe0] sm:$0xf0]  ;;  %2947 = vst [vmem:[#allocation7 + $0x40] sm:$0xff] %v3414_v9   ;;  %v3452_v27 = vld [vmem:[%s3782_s2 + $0x170] sm:$0xff] }
  0x24   :  { %2296 = vmatpush.bf16.msra.mxu2 %v2723_v29  ;;  %2309 = vmatpush.bf16.msra.mxu3 %v2727_v30  ;;  %v2683_v40 = vor.u32 %v2872_v35, %v2682_v31  ;;  %v2687_v41 = vor.u32 %v2868_v32, %v2684_v36  ;;  %v2690_v42 = vld [vmem:[#allocation7 + $0xc8] sm:$0xf]  ;;  %v2869_v43 = vld [vmem:[#allocation7 + $0xcc] sm:$0xf]  ;;  %2967 = vst [vmem:[#allocation7 + $0x60] sm:$0xff] %v3418_v16   ;;  %v3449_v32 = vld [vmem:[%s3782_s2 + $0x158] sm:$0xff] }
  0x25   :  { %v2873_v46 = vld [vmem:[#allocation7 + $0xe4] sm:$0xf0]  ;;  %v2692_v47 = vld [vmem:[#allocation7 + $0xe8] sm:$0xf0]  ;;  %2952 = vst [vmem:[#allocation7 + $0x48] sm:$0xff] %v3415_v19  }
  0x26   :  { %2271 = vmatpush.bf16.msra.mxu0 %v2683_v40  ;;  %2284 = vmatpush.bf16.msra.mxu1 %v2687_v41  ;;  %v2691_v49 = vor.u32 %v2873_v46, %v2690_v42  ;;  %v2695_v50 = vor.u32 %v2869_v43, %v2692_v47  ;;  %v2650_v51 = vld [vmem:[#allocation7 + $0x80] sm:$0xf]  ;;  %v2860_v52 = vld [vmem:[#allocation7 + $0x84] sm:$0xf]  ;;  %2972 = vst [vmem:[#allocation7 + $0x68] sm:$0xff] %v3419_v28  }
  0x27   :  { %v2864_v55 = vld [vmem:[#allocation7 + $0x9c] sm:$0xf0]  ;;  %v2652_v56 = vld [vmem:[#allocation7 + $0xa0] sm:$0xf0]  ;;  %31 = vst [vmem:[#allocation7] sm:$0xff] %v20_v33  }
  0x28   :  { %2297 = vmatpush.bf16.msra.mxu2 %v2691_v49  ;;  %2310 = vmatpush.bf16.msra.mxu3 %v2695_v50  ;;  %v2651_v59 = vor.u32 %v2864_v55, %v2650_v51  ;;  %v2655_v60 = vor.u32 %v2860_v52, %v2652_v56  ;;  %v2658_v61 = vld [vmem:[#allocation7 + $0x88] sm:$0xf]  ;;  %v2861_v62 = vld [vmem:[#allocation7 + $0x8c] sm:$0xf]  ;;  %2927 = vst [vmem:[#allocation7 + $0x20] sm:$0xff] %v3410_v37   ;;  %v3440_v50 = vld [vmem:[%s3782_s2 + $0x110] sm:$0xff] }
  0x29   :  { %v2865_v2 = vld [vmem:[#allocation7 + $0xa4] sm:$0xf0]  ;;  %v2660_v3 = vld [vmem:[#allocation7 + $0xa8] sm:$0xf0]  ;;  %2912 = vst [vmem:[#allocation7 + $0x8] sm:$0xff] %v3407_v44   ;;  %v3444_v52 = vld [vmem:[%s3782_s2 + $0x130] sm:$0xff] }
  0x2a   :  { %2272 = vmatpush.bf16.msra.mxu0 %v2651_v59  ;;  %2285 = vmatpush.bf16.msra.mxu1 %v2655_v60  ;;  %v2659_v5 = vor.u32 %v2865_v2, %v2658_v61  ;;  %v2663_v6 = vor.u32 %v2861_v62, %v2660_v3  ;;  %v2618_v7 = vld [vmem:[#allocation7 + $0x40] sm:$0xf]  ;;  %v2852_v8 = vld [vmem:[#allocation7 + $0x44] sm:$0xf]  ;;  %2932 = vst [vmem:[#allocation7 + $0x28] sm:$0xff] %v3411_v48   ;;  %v3441_v56 = vld [vmem:[%s3782_s2 + $0x118] sm:$0xff] }
  0x2b   :  { %v2826_v9 = vld [vmem:[#allocation7 + $0x1d0] sm:$0xf]  ;;  %v2902_v12 = vld [vmem:[#allocation7 + $0x1d4] sm:$0xf]  ;;  %v2856_v15 = vld [vmem:[#allocation7 + $0x5c] sm:$0xf0] }
  0x2c   :  { %v2828_v13 = vld [vmem:[#allocation7 + $0x1f0] sm:$0xf0]  ;;  %v2620_v16 = vld [vmem:[#allocation7 + $0x60] sm:$0xf0]  ;;  %3157 = vst [vmem:[#allocation7 + $0x190] sm:$0xff] %v3456_v53   ;;  %2298 = vmatpush.bf16.msra.mxu2 %v2659_v5  ;;  %2311 = vmatpush.bf16.msra.mxu3 %v2663_v6  ;;  %v2619_v10 = vor.u32 %v2856_v15, %v2618_v7  ;;  %v2827_v35 = vor.u32 %v2906_v11, %v2826_v9  ;;  %v3445_v60 = vld [vmem:[%s3782_s2 + $0x138] sm:$0xff] }
  0x2d   :  { %v2623_v17 = vor.u32 %v2852_v8, %v2620_v16  ;;  %v2626_v18 = vld [vmem:[#allocation7 + $0x48] sm:$0xf]  ;;  %v2853_v19 = vld [vmem:[#allocation7 + $0x4c] sm:$0xf]  ;;  %v2834_v20 = vld [vmem:[#allocation7 + $0x1d8] sm:$0xf]  ;;  %v2831_v36 = vor.u32 %v2902_v12, %v2828_v13 }
  0x2e   :  { %v2907_v21 = vld [vmem:[#allocation7 + $0x1f4] sm:$0xf0]  ;;  %v2903_v22 = vld [vmem:[#allocation7 + $0x1dc] sm:$0xf]  ;;  %1732 = vst [vmem:[#allocation7 + $0x1b0] sm:$0xf] %v1729_v57  ;;  %2273 = vmatpush.bf16.msra.mxu0 %v2619_v10 }
  0x2f   :  { %v2836_v23 = vld [vmem:[#allocation7 + $0x1f8] sm:$0xf0]  ;;  %v2857_v25 = vld [vmem:[#allocation7 + $0x64] sm:$0xf0]  ;;  %v2628_v26 = vld [vmem:[#allocation7 + $0x68] sm:$0xf0]  ;;  %2286 = vmatpush.bf16.msra.mxu1 %v2623_v17  ;;  %v2835_v43 = vor.u32 %v2907_v21, %v2834_v20 }
  0x30   :  { %1755 = vst [vmem:[#allocation7 + $0x1b4] sm:$0xf] %v1752_v4  ;;  %v2627_v28 = vor.u32 %v2857_v25, %v2626_v18  ;;  %v2631_v29 = vor.u32 %v2853_v19, %v2628_v26  ;;  %v2586_v30 = vld [vmem:[#allocation7] sm:$0xf]  ;;  %v2844_v31 = vld [vmem:[#allocation7 + $0x4] sm:$0xf]  ;;  %v2839_v44 = vor.u32 %v2903_v22, %v2836_v23 }
  0x31   :  { %3162 = vst [vmem:[#allocation7 + $0x198] sm:$0xff] %v3457_v63   ;;  %v2848_v33 = vld [vmem:[#allocation7 + $0x1c] sm:$0xf0]  ;;  %v2588_v34 = vld [vmem:[#allocation7 + $0x20] sm:$0xf0]  ;;  %v3432_v62 = vld [vmem:[%s3782_s2 + $0xd0] sm:$0xff] }
  0x32   :  { %1778 = vst [vmem:[#allocation7 + $0x1b8] sm:$0xf] %v1775_v14  ;;  %2299 = vmatpush.bf16.msra.mxu2 %v2627_v28  ;;  %2312 = vmatpush.bf16.msra.mxu3 %v2631_v29  ;;  %v2587_v37 = vor.u32 %v2848_v33, %v2586_v30  ;;  %v2591_v38 = vor.u32 %v2844_v31, %v2588_v34  ;;  %v2594_v39 = vld [vmem:[#allocation7 + $0x8] sm:$0xf]  ;;  %v2845_v40 = vld [vmem:[#allocation7 + $0xc] sm:$0xf] }
  0x33   :  { %1801 = vst [vmem:[#allocation7 + $0x1bc] sm:$0xf] %v1798_v1  ;;  %v2849_v41 = vld [vmem:[#allocation7 + $0x24] sm:$0xf0]  ;;  %v2596_v42 = vld [vmem:[#allocation7 + $0x28] sm:$0xf0] }
  0x34   :  { %2274 = vmatpush.bf16.msra.mxu0 %v2587_v37  ;;  %2287 = vmatpush.bf16.msra.mxu1 %v2591_v38  ;;  %v2595_v46 = vor.u32 %v2849_v41, %v2594_v39  ;;  %v2599_v47 = vor.u32 %v2845_v40, %v2596_v42  ;;  %v2794_v48 = vld [vmem:[#allocation7 + $0x190] sm:$0xf]  ;;  %v2894_v49 = vld [vmem:[#allocation7 + $0x194] sm:$0xf]  ;;  %3117 = vst [vmem:[#allocation7 + $0x150] sm:$0xff] %v3448_v24   ;;  %v3433_v4 = vld [vmem:[%s3782_s2 + $0xd8] sm:$0xff] }
  0x35   :  { %v2898_v51 = vld [vmem:[#allocation7 + $0x1ac] sm:$0xf0]  ;;  %3137 = vst [vmem:[#allocation7 + $0x170] sm:$0xff] %v3452_v27   ;;  %v3649_v55 = vld [vmem:[%s3780_s0] sm:$0xf]  ;;  %v3437_v7 = vld [vmem:[%s3782_s2 + $0xf8] sm:$0xff] }
  0x36   :  { %2300 = vmatpush.bf16.msra.mxu2 %v2595_v46  ;;  %2313 = vmatpush.bf16.msra.mxu3 %v2599_v47  ;;  %v2795_v53 = vor.u32 %v2898_v51, %v2794_v48  ;;  %3122 = vst [vmem:[#allocation7 + $0x158] sm:$0xff] %v3449_v32   ;;  %v3436_v2 = vld [vmem:[%s3782_s2 + $0xf0] sm:$0xff]  ;;  %v3425_v17 = vld [vmem:[%s3782_s2 + $0x98] sm:$0xff] }
  0x37   :  { %v2796_v54 = vld [vmem:[#allocation7 + $0x1b0] sm:$0xf0]  ;;  %3142 = vst [vmem:[#allocation7 + $0x178] sm:$0xff] %v3453_v45   ;;  %2275 = vmatmul.bf16.vlgmr.msra.gmra.mxu0 %v3649_v55  ;;  %2288 = vmatmul.bf16.vlgmr.msra.gmra.mxu1 %v3649_v55  ;;  %v3429_v22 = vld [vmem:[%s3782_s2 + $0xb8] sm:$0xff] }
  0x38   :  { %2319 = vmatpush.bf16.msrb.mxu0 %v2827_v35  ;;  %2332 = vmatpush.bf16.msrb.mxu1 %v2831_v36  ;;  %v2799_v57 = vor.u32 %v2894_v49, %v2796_v54  ;;  %v2802_v58 = vld [vmem:[#allocation7 + $0x198] sm:$0xf]  ;;  %v2895_v59 = vld [vmem:[#allocation7 + $0x19c] sm:$0xf]  ;;  %3077 = vst [vmem:[#allocation7 + $0x110] sm:$0xff] %v3440_v50   ;;  %v3424_v11 = vld [vmem:[%s3782_s2 + $0x90] sm:$0xff] }
  0x39   :  { %v2899_v61 = vld [vmem:[#allocation7 + $0x1b4] sm:$0xf0]  ;;  %3097 = vst [vmem:[#allocation7 + $0x130] sm:$0xff] %v3444_v52   ;;  %2301 = vmatmul.bf16.vlgmr.msra.gmra.mxu2 %v3649_v55  ;;  %2314 = vmatmul.bf16.vlgmr.msra.gmra.mxu3 %v3649_v55  ;;  %v3428_v16 = vld [vmem:[%s3782_s2 + $0xb0] sm:$0xff] }
  0x3a   :  { %2345 = vmatpush.bf16.msrb.mxu2 %v2835_v43  ;;  %2358 = vmatpush.bf16.msrb.mxu3 %v2839_v44  ;;  %v2803_v63 = vor.u32 %v2899_v61, %v2802_v58  ;;  %v2804_v0 = vld [vmem:[#allocation7 + $0x1b8] sm:$0xf0]  ;;  %3082 = vst [vmem:[#allocation7 + $0x118] sm:$0xff] %v3441_v56   ;;  %v3416_v25 = vld [vmem:[%s3782_s2 + $0x50] sm:$0xff] }
  0x3b   :  { %v2807_v3 = vor.u32 %v2895_v59, %v2804_v0  ;;  %v2762_v5 = vld [vmem:[#allocation7 + $0x150] sm:$0xf]  ;;  %v2886_v6 = vld [vmem:[#allocation7 + $0x154] sm:$0xf]  ;;  %3102 = vst [vmem:[#allocation7 + $0x138] sm:$0xff] %v3445_v60   ;;  %v3417_v33 = vld [vmem:[%s3782_s2 + $0x58] sm:$0xff] }
  0x3c   :  { %2320 = vmatpush.bf16.msrb.mxu0 %v2795_v53  ;;  %2333 = vmatpush.bf16.msrb.mxu1 %v2799_v57  ;;  %v2890_v8 = vld [vmem:[#allocation7 + $0x16c] sm:$0xf0]  ;;  %v2764_v9 = vld [vmem:[#allocation7 + $0x170] sm:$0xf0]  ;;  %3037 = vst [vmem:[#allocation7 + $0xd0] sm:$0xff] %v3432_v62   ;;  %v3421_v38 = vld [vmem:[%s3782_s2 + $0x78] sm:$0xff] }
  0x3d   :  { %v2763_v12 = vor.u32 %v2890_v8, %v2762_v5  ;;  %v2767_v13 = vor.u32 %v2886_v6, %v2764_v9  ;;  %v2770_v14 = vld [vmem:[#allocation7 + $0x158] sm:$0xf]  ;;  %v2887_v15 = vld [vmem:[#allocation7 + $0x15c] sm:$0xf]  ;;  %3057 = vst [vmem:[#allocation7 + $0xf0] sm:$0xff] %v3436_v2   ;;  %v3420_v30 = vld [vmem:[%s3782_s2 + $0x70] sm:$0xff] }
  0x3e   :  { %2346 = vmatpush.bf16.msrb.mxu2 %v2803_v63  ;;  %2359 = vmatpush.bf16.msrb.mxu3 %v2807_v3  ;;  %v2891_v1 = vld [vmem:[#allocation7 + $0x174] sm:$0xf0]  ;;  %v2772_v10 = vld [vmem:[#allocation7 + $0x178] sm:$0xf0]  ;;  %3042 = vst [vmem:[#allocation7 + $0xd8] sm:$0xff] %v3433_v4   ;;  %v3408_v41 = vld [vmem:[%s3782_s2 + $0x10] sm:$0xff] }
  0x3f   :  { %v2771_v18 = vor.u32 %v2891_v1, %v2770_v14  ;;  %v2775_v19 = vor.u32 %v2887_v15, %v2772_v10  ;;  %v2730_v20 = vld [vmem:[#allocation7 + $0x110] sm:$0xf]  ;;  %v2878_v21 = vld [vmem:[#allocation7 + $0x114] sm:$0xf]  ;;  %3062 = vst [vmem:[#allocation7 + $0xf8] sm:$0xff] %v3437_v7   ;;  %v3409_v49 = vld [vmem:[%s3782_s2 + $0x18] sm:$0xff] }
  0x40   :  { %2321 = vmatpush.bf16.msrb.mxu0 %v2763_v12  ;;  %2334 = vmatpush.bf16.msrb.mxu1 %v2767_v13  ;;  %v2882_v23 = vld [vmem:[#allocation7 + $0x12c] sm:$0xf0]  ;;  %v2732_v24 = vld [vmem:[#allocation7 + $0x130] sm:$0xf0]  ;;  %2997 = vst [vmem:[#allocation7 + $0x90] sm:$0xff] %v3424_v11   ;;  %v3413_v54 = vld [vmem:[%s3782_s2 + $0x38] sm:$0xff] }
  0x41   :  { %v2731_v26 = vor.u32 %v2882_v23, %v2730_v20  ;;  %v2735_v27 = vor.u32 %v2878_v21, %v2732_v24  ;;  %v2738_v28 = vld [vmem:[#allocation7 + $0x118] sm:$0xf]  ;;  %v2879_v29 = vld [vmem:[#allocation7 + $0x11c] sm:$0xf]  ;;  %3017 = vst [vmem:[#allocation7 + $0xb0] sm:$0xff] %v3428_v16   ;;  %v3412_v46 = vld [vmem:[%s3782_s2 + $0x30] sm:$0xff] }
  0x42   :  { %2347 = vmatpush.bf16.msrb.mxu2 %v2771_v18  ;;  %2360 = vmatpush.bf16.msrb.mxu3 %v2775_v19  ;;  %v2883_v31 = vld [vmem:[#allocation7 + $0x134] sm:$0xf0]  ;;  %v2740_v32 = vld [vmem:[#allocation7 + $0x138] sm:$0xf0]  ;;  %3002 = vst [vmem:[#allocation7 + $0x98] sm:$0xff] %v3425_v17  }
  0x43   :  { %v2739_v34 = vor.u32 %v2883_v31, %v2738_v28  ;;  %v2743_v35 = vor.u32 %v2879_v29, %v2740_v32  ;;  %v2698_v36 = vld [vmem:[#allocation7 + $0xd0] sm:$0xf]  ;;  %v2870_v37 = vld [vmem:[#allocation7 + $0xd4] sm:$0xf]  ;;  %3022 = vst [vmem:[#allocation7 + $0xb8] sm:$0xff] %v3429_v22  }
  0x44   :  { %2322 = vmatpush.bf16.msrb.mxu0 %v2731_v26  ;;  %2335 = vmatpush.bf16.msrb.mxu1 %v2735_v27  ;;  %v2874_v39 = vld [vmem:[#allocation7 + $0xec] sm:$0xf0]  ;;  %v2700_v40 = vld [vmem:[#allocation7 + $0xf0] sm:$0xf0]  ;;  %2957 = vst [vmem:[#allocation7 + $0x50] sm:$0xff] %v3416_v25  }
  0x45   :  { %v2699_v42 = vor.u32 %v2874_v39, %v2698_v36  ;;  %v2703_v43 = vor.u32 %v2870_v37, %v2700_v40  ;;  %v2706_v44 = vld [vmem:[#allocation7 + $0xd8] sm:$0xf]  ;;  %v2871_v45 = vld [vmem:[#allocation7 + $0xdc] sm:$0xf]  ;;  %2977 = vst [vmem:[#allocation7 + $0x70] sm:$0xff] %v3420_v30  }
  0x46   :  { %2348 = vmatpush.bf16.msrb.mxu2 %v2739_v34  ;;  %2361 = vmatpush.bf16.msrb.mxu3 %v2743_v35  ;;  %v2875_v47 = vld [vmem:[#allocation7 + $0xf4] sm:$0xf0]  ;;  %v2708_v48 = vld [vmem:[#allocation7 + $0xf8] sm:$0xf0]  ;;  %2962 = vst [vmem:[#allocation7 + $0x58] sm:$0xff] %v3417_v33  }
  0x47   :  { %v2707_v50 = vor.u32 %v2875_v47, %v2706_v44  ;;  %v2711_v51 = vor.u32 %v2871_v45, %v2708_v48  ;;  %v2666_v52 = vld [vmem:[#allocation7 + $0x90] sm:$0xf]  ;;  %v2862_v53 = vld [vmem:[#allocation7 + $0x94] sm:$0xf]  ;;  %2982 = vst [vmem:[#allocation7 + $0x78] sm:$0xff] %v3421_v38  }
  0x48   :  { %2323 = vmatpush.bf16.msrb.mxu0 %v2699_v42  ;;  %2336 = vmatpush.bf16.msrb.mxu1 %v2703_v43  ;;  %v2866_v56 = vld [vmem:[#allocation7 + $0xac] sm:$0xf0]  ;;  %v2668_v57 = vld [vmem:[#allocation7 + $0xb0] sm:$0xf0]  ;;  %2917 = vst [vmem:[#allocation7 + $0x10] sm:$0xff] %v3408_v41  }
  0x49   :  { %v2667_v58 = vor.u32 %v2866_v56, %v2666_v52  ;;  %v2671_v59 = vor.u32 %v2862_v53, %v2668_v57  ;;  %v2674_v60 = vld [vmem:[#allocation7 + $0x98] sm:$0xf]  ;;  %v2863_v61 = vld [vmem:[#allocation7 + $0x9c] sm:$0xf]  ;;  %2937 = vst [vmem:[#allocation7 + $0x30] sm:$0xff] %v3412_v46  }
  0x4a   :  { %2349 = vmatpush.bf16.msrb.mxu2 %v2707_v50  ;;  %2362 = vmatpush.bf16.msrb.mxu3 %v2711_v51  ;;  %v2867_v62 = vld [vmem:[#allocation7 + $0xb4] sm:$0xf0]  ;;  %v2676_v63 = vld [vmem:[#allocation7 + $0xb8] sm:$0xf0]  ;;  %2922 = vst [vmem:[#allocation7 + $0x18] sm:$0xff] %v3409_v49  }
  0x4b   :  { %v2675_v0 = vor.u32 %v2867_v62, %v2674_v60  ;;  %v2679_v2 = vor.u32 %v2863_v61, %v2676_v63  ;;  %v2634_v3 = vld [vmem:[#allocation7 + $0x50] sm:$0xf]  ;;  %v2854_v4 = vld [vmem:[#allocation7 + $0x54] sm:$0xf]  ;;  %2942 = vst [vmem:[#allocation7 + $0x38] sm:$0xff] %v3413_v54  }
  0x4c   :  { %2324 = vmatpush.bf16.msrb.mxu0 %v2667_v58  ;;  %2337 = vmatpush.bf16.msrb.mxu1 %v2671_v59  ;;  %v2858_v5 = vld [vmem:[#allocation7 + $0x6c] sm:$0xf0]  ;;  %v2636_v6 = vld [vmem:[#allocation7 + $0x70] sm:$0xf0] }
  0x4d   :  { %v2635_v7 = vor.u32 %v2858_v5, %v2634_v3  ;;  %v2639_v8 = vor.u32 %v2854_v4, %v2636_v6  ;;  %v2642_v9 = vld [vmem:[#allocation7 + $0x58] sm:$0xf]  ;;  %v2855_v11 = vld [vmem:[#allocation7 + $0x5c] sm:$0xf] }
  0x4e   :  { %2350 = vmatpush.bf16.msrb.mxu2 %v2675_v0  ;;  %2363 = vmatpush.bf16.msrb.mxu3 %v2679_v2  ;;  %v2859_v12 = vld [vmem:[#allocation7 + $0x74] sm:$0xf0]  ;;  %v2644_v13 = vld [vmem:[#allocation7 + $0x78] sm:$0xf0] }
  0x4f   :  { %v2643_v14 = vor.u32 %v2859_v12, %v2642_v9  ;;  %v2647_v15 = vor.u32 %v2855_v11, %v2644_v13  ;;  %v2602_v16 = vld [vmem:[#allocation7 + $0x10] sm:$0xf]  ;;  %v2846_v1 = vld [vmem:[#allocation7 + $0x14] sm:$0xf]  ;;  %v3466_v12 = vmov 0  }
  0x50   :  { %2325 = vmatpush.bf16.msrb.mxu0 %v2635_v7  ;;  %2338 = vmatpush.bf16.msrb.mxu1 %v2639_v8  ;;  %v2850_v10 = vld [vmem:[#allocation7 + $0x2c] sm:$0xf0]  ;;  %v2604_v17 = vld [vmem:[#allocation7 + $0x30] sm:$0xf0] }
  0x51   :  { %v2603_v18 = vor.u32 %v2850_v10, %v2602_v16  ;;  %v2607_v19 = vor.u32 %v2846_v1, %v2604_v17  ;;  %v2610_v20 = vld [vmem:[#allocation7 + $0x18] sm:$0xf]  ;;  %v2847_v21 = vld [vmem:[#allocation7 + $0x1c] sm:$0xf]  ;;  %3461 = vset.pattern.permute.xlu1 %v3466_v12 }
  0x52   :  { %2351 = vmatpush.bf16.msrb.mxu2 %v2643_v14  ;;  %2364 = vmatpush.bf16.msrb.mxu3 %v2647_v15  ;;  %v2851_v22 = vld [vmem:[#allocation7 + $0x34] sm:$0xf0]  ;;  %v2612_v23 = vld [vmem:[#allocation7 + $0x38] sm:$0xf0] }
  0x53   :  { %v2611_v24 = vor.u32 %v2851_v22, %v2610_v20  ;;  %v2615_v25 = vor.u32 %v2847_v21, %v2612_v23 }
  0x54   :  { %2326 = vmatpush.bf16.msrb.mxu0 %v2603_v18  ;;  %2339 = vmatpush.bf16.msrb.mxu1 %v2607_v19  ;;  %v2407_v19 = vld [vmem:[%s3781_s1] sm:$0xff] }
  0x56   :  { %2352 = vmatpush.bf16.msrb.mxu2 %v2611_v24  ;;  %2365 = vmatpush.bf16.msrb.mxu3 %v2615_v25  ;;  %v3468_v24 = vmov 1  }
  0x57   :  { %2327 = vmatmul.bf16.vlgmr.msrb.gmra.mxu0 %v3649_v55  ;;  %2340 = vmatmul.bf16.vlgmr.msrb.gmra.mxu1 %v3649_v55 }
  0x58   :  { %3462 = vset.pattern.permute.xlu2 %v3468_v24  ;;  %3463 = vset.pattern.permute.xlu0 %v3468_v24 }
  0x59   :  { %2353 = vmatmul.bf16.vlgmr.msrb.gmra.mxu2 %v3649_v55  ;;  %2366 = vmatmul.bf16.vlgmr.msrb.gmra.mxu3 %v3649_v55 }
  0xb4   :  { %v3713_v26 = vpop.f32.mrf.mxu0  ;;  %v3715_v27 = vpop.f32.mrf.mxu1 }
  0xb5   :  { %v2371_v34 = vadd.f32 %v3715_v27, %v3713_v26 }
  0xbc   :  { %v3717_v28 = vpop.f32.mrf.mxu2  ;;  %v3719_v29 = vpop.f32.mrf.mxu3 }
  0xbd   :  { %v2278_v30 = vpop.f32.mrf.mxu0  ;;  %v2291_v31 = vpop.f32.mrf.mxu1  ;;  %v2372_v35 = vadd.f32 %v2371_v34, %v3717_v28 }
  0xbf   :  { %v2373_v37 = vadd.f32 %v2372_v35, %v3719_v29 }
  0xc4   :  { %v2304_v32 = vpop.f32.mrf.mxu2  ;;  %v2317_v33 = vpop.f32.mrf.mxu3 }
  0xd4   :  { %v3724_v36 = vpop.f32.mrf.mxu0  ;;  %v3726_v55 = vpop.f32.mrf.mxu1 }
  0xd5   :  { %v2374_v38 = vadd.f32 %v2373_v37, %v3724_v36 }
  0xd7   :  { %v2375_v39 = vadd.f32 %v2374_v38, %v3726_v55 }
  0xdc   :  { %v3731_v40 = vpop.f32.mrf.mxu2  ;;  %v3733_v41 = vpop.f32.mrf.mxu3 }
  0xdd   :  { %v2330_v42 = vpop.f32.mrf.mxu0  ;;  %v2343_v43 = vpop.f32.mrf.mxu1  ;;  %v2376_v44 = vadd.f32 %v2375_v39, %v3731_v40 }
  0xdf   :  { %v2377_v45 = vadd.f32 %v2376_v44, %v3733_v41 }
  0xe1   :  { %2378 = vadd.xlane.f32.xlu0 %v2377_v45 }
  0xe4   :  { %v2356_v46 = vpop.f32.mrf.mxu2  ;;  %v2369_v47 = vpop.f32.mrf.mxu3 }
 0x154   :  { %v2379_v48 = vpop.xlane.xlu0 %2378 }
 0x155   :  { %v2380_v49 = vmul.f32 0.0009765625, %v2379_v48 }
 0x157   :  { %v2381_v50 = vsub.f32 %v3713_v26, %v2380_v49  ;;  %v2382_v51 = vsub.f32 %v3715_v27, %v2380_v49  ;;  %v2383_v52 = vsub.f32 %v3717_v28, %v2380_v49  ;;  %v2384_v53 = vsub.f32 %v3719_v29, %v2380_v49 }
 0x158   :  { %v2385_v57 = vsub.f32 %v3724_v36, %v2380_v49  ;;  %v2386_v60 = vsub.f32 %v3726_v55, %v2380_v49  ;;  %v2387_v63 = vsub.f32 %v3731_v40, %v2380_v49  ;;  %v2388_v3 = vsub.f32 %v3733_v41, %v2380_v49 }
 0x159   :  { %v2389_v54 = vmul.f32 %v2381_v50, %v2381_v50  ;;  %v2390_v56 = vmul.f32 %v2382_v51, %v2382_v51  ;;  %v2391_v58 = vmul.f32 %v2383_v52, %v2383_v52  ;;  %v2392_v61 = vmul.f32 %v2384_v53, %v2384_v53 }
 0x15a   :  { %v2393_v0 = vmul.f32 %v2385_v57, %v2385_v57  ;;  %v2394_v4 = vmul.f32 %v2386_v60, %v2386_v60  ;;  %v2395_v6 = vmul.f32 %v2387_v63, %v2387_v63  ;;  %v2396_v8 = vmul.f32 %v2388_v3, %v2388_v3 }
 0x15b   :  { %v2397_v59 = vadd.f32 %v2390_v56, %v2389_v54 }
 0x15d   :  { %v2398_v62 = vadd.f32 %v2397_v59, %v2391_v58 }
 0x15f   :  { %v2399_v2 = vadd.f32 %v2398_v62, %v2392_v61 }
 0x161   :  { %v2400_v5 = vadd.f32 %v2399_v2, %v2393_v0 }
 0x163   :  { %v2401_v7 = vadd.f32 %v2400_v5, %v2394_v4 }
 0x165   :  { %v2402_v9 = vadd.f32 %v2401_v7, %v2395_v6 }
 0x167   :  { %v2403_v11 = vadd.f32 %v2402_v9, %v2396_v8 }
 0x169   :  { %2404 = vadd.xlane.f32.xlu0 %v2403_v11 }
 0x1dc   :  { %v2405_v13 = vpop.xlane.xlu0 %2404 }
 0x1dd   :  { %v2406_v14 = vmul.f32 0.0009765625, %v2405_v13 }
 0x1df   :  { %v2408_v15 = vadd.f32 1e-05, %v2406_v14 }
 0x1e1   :  { %3464 = vrsqrt.f32 %v2408_v15  ;;  %vm2415_vm2 = vweird.f32 %v2408_v15 }
 0x1e7   :  { %v3465_v16 = vpop.eup %3464 }
 0x1e8   :  { %v2410_v1 = vmul.f32 %v3465_v16, %v2408_v15  ;;  %vm2416_vm1 = vweird.f32 %v3465_v16 }
 0x1e9   :  { %vm2417_vm3 = vmor %vm2415_vm2, %vm2416_vm1 }
 0x1ea   :  { %v2411_v10 = vmul.f32 %v3465_v16, %v2410_v1 }
 0x1ec   :  { %v2412_v17 = vmul.f32 0.5, %v2411_v10 }
 0x1ee   :  { %v2413_v18 = vsub.f32 1.5, %v2412_v17 }
 0x1f0   :  { %v2414_v20 = vmul.f32 %v3465_v16, %v2413_v18 }
 0x1f2   :  { %v2418_v21 = vsel %vm2417_vm3, %v3465_v16, %v2414_v20 }
 0x1f3   :  { %v2419_v22 = vmul.f32 %v2418_v21, %v2407_v19 }
 0x1f5   :  { %v2420_v23 = vmul.f32 %v2419_v22, %v2380_v49 }
 0x1f7   :  { %2422 = vrot.lane.b32.xlu1 %v2420_v23, %s3467_s21 }
 0x1ff   :  { %2428 = vperm.xlu1 %3461, %v2419_v22  }
 0x269   :  { %v2423_v25 = vpop.permute.xlu1 %2422 }
 0x26a   :  { %v2425_v30 = vsub.f32 %v2407_v19, %v2423_v25 }
 0x26c   :  { %2441 = vperm.xlu2 %3462, %v2425_v30  }
 0x271   :  { %v2429_v31 = vpop.permute.xlu1 %2428 }
 0x272   :  { %v2431_v32 = vmul.f32 %v2429_v31, %v3713_v26  ;;  %v2432_v33 = vmul.f32 %v2429_v31, %v3715_v27  ;;  %v2433_v34 = vmul.f32 %v2429_v31, %v3717_v28  ;;  %v2434_v35 = vmul.f32 %v2429_v31, %v3719_v29 }
 0x273   :  { %v2435_v37 = vmul.f32 %v2429_v31, %v3724_v36  ;;  %v2436_v38 = vmul.f32 %v2429_v31, %v3726_v55  ;;  %v2437_v39 = vmul.f32 %v2429_v31, %v3731_v40  ;;  %v2438_v47 = vmul.f32 %v2429_v31, %v3733_v41 }
 0x2c6   :  { %v2442_v42 = vpop.permute.xlu2 %2441 }
 0x2c7   :  { %v2444_v43 = vadd.f32 %v2442_v42, %v2431_v32  ;;  %v2445_v44 = vadd.f32 %v2442_v42, %v2432_v33  ;;  %v2446_v45 = vadd.f32 %v2442_v42, %v2433_v34  ;;  %v2447_v46 = vadd.f32 %v2442_v42, %v2434_v35 }
 0x2c8   :  { %v2448_v26 = vadd.f32 %v2442_v42, %v2435_v37  ;;  %v2449_v48 = vadd.f32 %v2442_v42, %v2436_v38  ;;  %v2450_v27 = vadd.f32 %v2442_v42, %v2437_v39  ;;  %v2451_v29 = vadd.f32 %v2442_v42, %v2438_v47 }
 0x2c9   :  { %v2452_v49 = vmax.f32 %v2444_v43, 0.0  ;;  %v2453_v28 = vmax.f32 %v2445_v44, 0.0  ;;  %v2454_v50 = vmax.f32 %v2446_v45, 0.0  ;;  %v2455_v51 = vmax.f32 %v2447_v46, 0.0 }
 0x2ca   :  { %v2456_v36 = vmax.f32 %v2448_v26, 0.0  ;;  %v2457_v55 = vmax.f32 %v2449_v48, 0.0  ;;  %v2458_v40 = vmax.f32 %v2450_v27, 0.0  ;;  %v2459_v41 = vmax.f32 %v2451_v29, 0.0 }
 0x2cb   :  { %2460 = vst [vmem:[%s3784_s4] sm:$0xff] %v2452_v49 }
 0x2cc   :  { %2461 = vst [vmem:[%s3784_s4 + $0x8] sm:$0xff] %v2453_v28 }
 0x2cd   :  { %2462 = vst [vmem:[%s3784_s4 + $0x10] sm:$0xff] %v2454_v50 }
 0x2ce   :  { %2463 = vst [vmem:[%s3784_s4 + $0x18] sm:$0xff] %v2455_v51 }
 0x2cf   :  { %2840 = vst [vmem:[%s3784_s4 + $0x20] sm:$0xff] %v2456_v36 }
 0x2d0   :  { %2841 = vst [vmem:[%s3784_s4 + $0x28] sm:$0xff] %v2457_v55 }
 0x2d1   :  { %2842 = vst [vmem:[%s3784_s4 + $0x30] sm:$0xff] %v2458_v40 }
 0x2d2   :  { %2843 = vst [vmem:[%s3784_s4 + $0x38] sm:$0xff] %v2459_v41 }

</bundles_post_ra>
